<compile_context>
chip_gen: v6e
topology: v6e:2x2x1
jax: 0.10.0
libtpu: 0.0.40
codegen_flags: <defaults>
</compile_context>

<pallas_src>
import math
import functools

import jax
import jax.numpy as jnp
from jax import lax
from jax.experimental import pallas as pl
from jax.experimental.pallas import tpu as pltpu


def _make_pe(max_len: int, d_model: int) -> jnp.ndarray:
    """Deterministic sinusoidal positional-encoding table, shape (max_len, d_model), f32."""
    position = jnp.arange(max_len, dtype=jnp.float32)[:, None]                 # (max_len, 1)
    angular_speed = jnp.exp(
        jnp.arange(0, d_model, 2, dtype=jnp.float32) * (-math.log(10000.0) / d_model)
    )                                                                           # (ceil(d/2),)
    args = position * angular_speed                                             # (max_len, ceil(d/2))
    pe = jnp.zeros((max_len, d_model), dtype=jnp.float32)
    pe = pe.at[:, 0::2].set(jnp.sin(args))
    pe = pe.at[:, 1::2].set(jnp.cos(args)[:, : d_model // 2])                   # odd d_model safe
    return pe


def _pe_layernorm_kernel(x_ref, pe_ref, g_ref, b_ref, o_ref, *, scale: float, eps: float, inv_d: float):
    # x_ref / o_ref: (tile_b, tile_l, D);  pe_ref: (tile_l, D) f32;  g_ref / b_ref: (1, D) f32.
    x = x_ref[...].astype(jnp.float32)
    h = x * scale + pe_ref[...]                      # PositionalEncoding.forward (PE bcast over batch)
    # One-pass LayerNorm stats over d_model (single pair of XLU cross-lane reductions).
    s = jnp.sum(h, axis=-1, keepdims=True)
    ss = jnp.sum(h * h, axis=-1, keepdims=True)
    mean = s * inv_d
    var = jnp.maximum(ss * inv_d - mean * mean, 0.0)
    inv = lax.rsqrt(var + eps)                        # EUP transcendental (free slot)
    y = (h - mean) * inv * g_ref[...] + b_ref[...]    # (1, D) params broadcast over (tb, tl, D)
    o_ref[...] = y.astype(o_ref.dtype)


def _tpu_vmem_capacity_bytes() -> int:
    """Per-core VMEM capacity; conservative (v7x, 64 MiB) fallback if the query fails."""
    try:
        return int(pltpu.get_tpu_info().vmem_capacity_bytes)
    except Exception:
        return 64 * 1024 * 1024


def _choose_tiles(B: int, L: int, D: int, itemsize: int, target_bytes: int):
    """Pick (tile_b, tile_l): blocks ~target_bytes, dtype-aligned rows, prefer exact divisors."""
    # Sublane multiple is dtype dependent: 8 rows f32, 16 bf16, 32 int8/fp8.
    sub = 8 * max(1, 4 // max(1, itemsize))
    # Size the tile on the f32 in-kernel intermediate footprint (conservative for bf16 inputs).
    row_bytes = D * max(4, itemsize)
    budget_rows = max(sub, target_bytes // max(1, row_bytes))
    if L <= budget_rows:
        # Whole sequence fits one tile -> fold batch into the block so DMAs stay large.
        cap_b = min(B, max(1, budget_rows // max(1, L)))
        tile_b = max(d for d in range(1, cap_b + 1) if B % d == 0)
        return tile_b, L
    # Long sequence: tile L only; prefer a multiple-of-`sub` divisor of L within budget.
    best = None
    for t in range(sub, int(budget_rows) + 1, sub):
        if L % t == 0:
            best = t
    if best is None:
        # No aligned divisor fits: largest aligned tile; the trailing partial block reads OOB
        # garbage rows. Safe ONLY because LayerNorm is per-row and OOB output rows are dropped;
        # keep this invariant if the kernel ever grows cross-row ops.
        best = max(sub, (int(budget_rows) // sub) * sub)
    return 1, best


def encoder_transf_forward(x, pe_table, ln_gamma, ln_beta, *, d_model: int, eps: float = 1e-5):
    """Pallas forward: LayerNorm(x * sqrt(d_model) + pe_table[:L])."""
    # TODO(synk): EncoderTransf.layers (the user-supplied `encoder_layer`: attention + FFN) is an
    # external dependency not defined in the spec; real encoder layers slot between the PE add and
    # the final LayerNorm. Highest-value follow-up: fuse this PE+LayerNorm prologue into the first
    # encoder layer's QKV-projection pallas_call to remove one full HBM round trip of x.
    B, L, D = x.shape
    assert D == d_model
    assert L <= pe_table.shape[0]
    dtype = x.dtype
    itemsize = jnp.dtype(dtype).itemsize

    # PE / LayerNorm params stay f32 regardless of x.dtype (accuracy, negligible bandwidth).
    pe_f32 = pe_table.astype(jnp.float32)
    gamma2d = jnp.reshape(ln_gamma, (1, D)).astype(jnp.float32)
    beta2d = jnp.reshape(ln_beta, (1, D)).astype(jnp.float32)

    # Generation-aware tile / VMEM budgets.
    vmem_cap = _tpu_vmem_capacity_bytes()
    target_bytes = 4 * 1024 * 1024 if vmem_cap >= 96 * 1024 * 1024 else 2 * 1024 * 1024
    vmem_limit = min(64 * 1024 * 1024, vmem_cap // 2)

    tile_b, tile_l = _choose_tiles(B, L, D, itemsize, target_bytes)
    num_l = pl.cdiv(L, tile_l)
    num_b = pl.cdiv(B, tile_b)

    kernel = functools.partial(
        _pe_layernorm_kernel, scale=math.sqrt(d_model), eps=eps, inv_d=1.0 / D
    )

    # Grid order: L outer, B inner keeps the PE tile's block index constant across the inner axis
    # (VMEM-resident, read once). If the sequence is a single tile, lead with the batch axis so
    # the megacore-sharded "parallel" axis on v7x has >=2 iterations.
    b_leading = (num_l == 1 and num_b > 1)
    if b_leading:
        grid = (num_b, num_l)
        x_map = lambda b, l: (b, l, 0)
        pe_map = lambda b, l: (l, 0)
        p_map = lambda b, l: (0, 0)
    else:
        grid = (num_l, num_b)
        x_map = lambda l, b: (b, l, 0)
        pe_map = lambda l, b: (l, 0)
        p_map = lambda l, b: (0, 0)

    grid_spec = pltpu.PrefetchScalarGridSpec(
        num_scalar_prefetch=0,
        grid=grid,
        in_specs=[
            pl.BlockSpec((tile_b, tile_l, D), x_map),   # x tile (batch folded into block)
            pl.BlockSpec((tile_l, D), pe_map),          # PE windowed from the full table
            pl.BlockSpec((1, D), p_map),                # LayerNorm gamma (f32)
            pl.BlockSpec((1, D), p_map),                # LayerNorm beta  (f32)
        ],
        out_specs=pl.BlockSpec((tile_b, tile_l, D), x_map),
    )

    cost = pl.CostEstimate(
        flops=9 * B * L * D,
        transcendentals=B * L,
        bytes_accessed=2 * B * L * D * itemsize + (L * D + 2 * D) * 4,
    )

    return pl.pallas_call(
        kernel,
        out_shape=jax.ShapeDtypeStruct((B, L, D), dtype),
        grid_spec=grid_spec,
        compiler_params=pltpu.CompilerParams(
            dimension_semantics=("parallel", "parallel"),
            vmem_limit_bytes=vmem_limit,
        ),
        cost_estimate=cost,
    )(x, pe_f32, gamma2d, beta2d)


if __name__ == "__main__":
    max_len = 16
    d_model = 32
    batch = 2
    seq = 8
    eps = 1e-5

    pe_table = _make_pe(max_len, d_model)              # (max_len, d_model) f32

    key = jax.random.PRNGKey(0)
    kx, kg, kb = jax.random.split(key, 3)
    x = jax.random.normal(kx, (batch, seq, d_model), dtype=jnp.float32)
    # nn.LayerNorm defaults gamma=1, beta=0; perturb so the correctness check is non-trivial.
    gamma = 1.0 + 0.1 * jax.random.normal(kg, (d_model,), dtype=jnp.float32)
    beta = 0.1 * jax.random.normal(kb, (d_model,), dtype=jnp.float32)

    out = encoder_transf_forward(x, pe_table, gamma, beta, d_model=d_model, eps=eps)
    out = jax.block_until_ready(out)

    # Plain-JAX reference of the implemented forward: LayerNorm(PE(x))  (encoder layers = TODO).
    h = x * math.sqrt(d_model) + pe_table[None, :seq, :]
    mean = h.mean(-1, keepdims=True)
    var = ((h - mean) ** 2).mean(-1, keepdims=True)
    ref = (h - mean) / jnp.sqrt(var + eps) * gamma + beta

    assert out.shape == (batch, seq, d_model)
    assert jnp.allclose(out, ref, atol=1e-4, rtol=1e-4)

    print("KERNEL_OK")
</pallas_src>

<mosaic_0001>
module attributes {stable_mosaic.version = 11 : i64} {
  func.func @_pe_layernorm_kernel(%arg0: i32, %arg1: i32, %arg2: memref<2x8x32xf32, #tpu.memory_space<vmem>>, %arg3: memref<8x32xf32, #tpu.memory_space<vmem>>, %arg4: memref<1x32xf32, #tpu.memory_space<vmem>>, %arg5: memref<1x32xf32, #tpu.memory_space<vmem>>, %arg6: memref<2x8x32xf32, #tpu.memory_space<vmem>>) attributes {dimension_semantics = [#tpu.dimension_semantics<parallel>, #tpu.dimension_semantics<parallel>], iteration_bounds = array<i64: 1, 1>, scalar_prefetch = 0 : i64, scratch_operands = 0 : i64, tpu.core_type = #tpu.core_type<tc>, window_params = [{transform_indices = @transform_0, window_bounds = array<i64: 2, 8, 32>}, {transform_indices = @transform_1, window_bounds = array<i64: 8, 32>}, {pipeline_mode = #tpu.pipeline_mode<synchronous>, transform_indices = @transform_2, window_bounds = array<i64: 1, 32>}, {pipeline_mode = #tpu.pipeline_mode<synchronous>, transform_indices = @transform_3, window_bounds = array<i64: 1, 32>}, {transform_indices = @transform_4, window_bounds = array<i64: 2, 8, 32>}]} {
    %c0 = arith.constant 0 : index
    %c0_0 = arith.constant 0 : index
    %c0_1 = arith.constant 0 : index
    %0 = vector.load %arg2[%c0, %c0_0, %c0_1] : memref<2x8x32xf32, #tpu.memory_space<vmem>>, vector<2x8x32xf32>
    %cst = arith.constant 5.65685415 : f32
    %1 = vector.broadcast %cst : f32 to vector<2x8x32xf32>
    %2 = arith.mulf %0, %1 : vector<2x8x32xf32>
    %c0_2 = arith.constant 0 : index
    %c0_3 = arith.constant 0 : index
    %3 = vector.load %arg3[%c0_2, %c0_3] : memref<8x32xf32, #tpu.memory_space<vmem>>, vector<8x32xf32>
    %4 = vector.shape_cast %3 : vector<8x32xf32> to vector<1x8x32xf32>
    %5 = vector.broadcast %4 : vector<1x8x32xf32> to vector<2x8x32xf32>
    %6 = arith.addf %2, %5 : vector<2x8x32xf32>
    %cst_4 = arith.constant dense<0.000000e+00> : vector<2x8xf32>
    %7 = vector.multi_reduction <add>, %6, %cst_4 [2] : vector<2x8x32xf32> to vector<2x8xf32>
    %8 = vector.shape_cast %7 : vector<2x8xf32> to vector<2x8x1xf32>
    %9 = arith.mulf %6, %6 : vector<2x8x32xf32>
    %cst_5 = arith.constant dense<0.000000e+00> : vector<2x8xf32>
    %10 = vector.multi_reduction <add>, %9, %cst_5 [2] : vector<2x8x32xf32> to vector<2x8xf32>
    %11 = vector.shape_cast %10 : vector<2x8xf32> to vector<2x8x1xf32>
    %cst_6 = arith.constant 3.125000e-02 : f32
    %12 = vector.broadcast %cst_6 : f32 to vector<2x8x1xf32>
    %13 = arith.mulf %8, %12 : vector<2x8x1xf32>
    %cst_7 = arith.constant 3.125000e-02 : f32
    %14 = vector.broadcast %cst_7 : f32 to vector<2x8x1xf32>
    %15 = arith.mulf %11, %14 : vector<2x8x1xf32>
    %16 = arith.mulf %13, %13 : vector<2x8x1xf32>
    %17 = arith.subf %15, %16 : vector<2x8x1xf32>
    %cst_8 = arith.constant 0.000000e+00 : f32
    %18 = vector.broadcast %cst_8 : f32 to vector<2x8x1xf32>
    %19 = arith.maximumf %17, %18 : vector<2x8x1xf32>
    %cst_9 = arith.constant 9.99999974E-6 : f32
    %20 = vector.broadcast %cst_9 : f32 to vector<2x8x1xf32>
    %21 = arith.addf %19, %20 : vector<2x8x1xf32>
    %22 = math.rsqrt %21 : vector<2x8x1xf32>
    %23 = vector.broadcast %13 : vector<2x8x1xf32> to vector<2x8x32xf32>
    %24 = arith.subf %6, %23 : vector<2x8x32xf32>
    %25 = vector.broadcast %22 : vector<2x8x1xf32> to vector<2x8x32xf32>
    %26 = arith.mulf %24, %25 : vector<2x8x32xf32>
    %c0_10 = arith.constant 0 : index
    %c0_11 = arith.constant 0 : index
    %27 = vector.load %arg4[%c0_10, %c0_11] : memref<1x32xf32, #tpu.memory_space<vmem>>, vector<1x32xf32>
    %28 = vector.shape_cast %27 : vector<1x32xf32> to vector<1x1x32xf32>
    %29 = vector.broadcast %28 : vector<1x1x32xf32> to vector<2x8x32xf32>
    %30 = arith.mulf %26, %29 : vector<2x8x32xf32>
    %c0_12 = arith.constant 0 : index
    %c0_13 = arith.constant 0 : index
    %31 = vector.load %arg5[%c0_12, %c0_13] : memref<1x32xf32, #tpu.memory_space<vmem>>, vector<1x32xf32>
    %32 = vector.shape_cast %31 : vector<1x32xf32> to vector<1x1x32xf32>
    %33 = vector.broadcast %32 : vector<1x1x32xf32> to vector<2x8x32xf32>
    %34 = arith.addf %30, %33 : vector<2x8x32xf32>
    %c0_14 = arith.constant 0 : index
    %c0_15 = arith.constant 0 : index
    %c0_16 = arith.constant 0 : index
    %35 = vector.load %arg6[%c0_14, %c0_15, %c0_16] : memref<2x8x32xf32, #tpu.memory_space<vmem>>, vector<2x8x32xf32>
    tpu.vector_store %arg6[%c0_14, %c0_15, %c0_16], %34 {strides = array<i32>} : memref<2x8x32xf32, #tpu.memory_space<vmem>>, vector<2x8x32xf32>,
    return
  }
  func.func @transform_0(%arg0: i32, %arg1: i32) -> (i32, i32, i32) {
    %c0_i32 = arith.constant 0 : i32
    %c0_i32_0 = arith.constant 0 : i32
    return %arg1, %arg0, %c0_i32 : i32, i32, i32
  }
  func.func @transform_1(%arg0: i32, %arg1: i32) -> (i32, i32) {
    %c0_i32 = arith.constant 0 : i32
    %c0_i32_0 = arith.constant 0 : i32
    return %arg0, %c0_i32 : i32, i32
  }
  func.func @transform_2(%arg0: i32, %arg1: i32) -> (i32, i32) {
    %c0_i32 = arith.constant 0 : i32
    %c0_i32_0 = arith.constant 0 : i32
    %c0_i32_1 = arith.constant 0 : i32
    return %c0_i32, %c0_i32_0 : i32, i32
  }
  func.func @transform_3(%arg0: i32, %arg1: i32) -> (i32, i32) {
    %c0_i32 = arith.constant 0 : i32
    %c0_i32_0 = arith.constant 0 : i32
    %c0_i32_1 = arith.constant 0 : i32
    return %c0_i32, %c0_i32_0 : i32, i32
  }
  func.func @transform_4(%arg0: i32, %arg1: i32) -> (i32, i32, i32) {
    %c0_i32 = arith.constant 0 : i32
    %c0_i32_0 = arith.constant 0 : i32
    return %arg1, %arg0, %c0_i32 : i32, i32, i32
  }
}

</mosaic_0001>

<bundles_post_ra>
// kernel: tpu_custom_call.1
= control target key start
LH: loop header
LB: loop body
LE: loop exit
PB: predicated region body
PF: predicated region fallthrough
CT: control target
= control target key end

     0   :  { %9 = vsyncpa [#allocation3], 0  ;;  %s256_s0 = inlined_call_operand.hbm [shape: f32[2,8,32], index: 0, kind: input, shape index: {}]   ;;  %s257_s1 = inlined_call_operand.hbm [shape: f32[16,32], index: 1, kind: input, shape index: {}]   ;;  %s258_s2 = inlined_call_operand.vmem [shape: f32[1,32], index: 2, kind: input, shape index: {}]   ;;  %s259_s3 = inlined_call_operand.vmem [shape: f32[1,32], index: 3, kind: input, shape index: {}]   ;;  %s260_s4 = inlined_call_operand.hbm [shape: f32[2,8,32], index: 4, kind: output, shape index: {}]  }
   0x1   :  { %10 = vsyncpa [#allocation6], 0 }
   0x2   :  { %11 = vsyncpa [#allocation4], 0  ;;  %s199_s15 = smov [#allocation2]  }
   0x3   :  { %s17_s16 = sshll.u32 %s199_s15, 4  ;;  %s18_s16 = int_to_ptr.vmem [resolvable:$true] %s17_s16 }
   0x4   :  { %s141_s17 = scalar_lea.vmem %s18_s16, 256  ;;  %p146_p1 = scmp.lt.s32.totalorder %s18_s16, %s18_s16 }
   0x5   :  { %p142_p0 = scmp.ne.s32.totalorder %s18_s16, %s141_s17  ;;  %p147_p2 = scmp.lt.s32.totalorder %s141_s17, %s141_s17 }
   0x7   :  { %p148_p3 = por %p147_p2, %p146_p1 }
   0x9   :  { %p149_p4 = pnand %p148_p3, %p142_p0 }
   0xb   :  { %152 = shalt.err (!%p149_p4)
}
   0xc   :  { %s200_s18 = smov 128   ;;  %s201_s19 = smov 8  }
   0xd   :  { %23 = dma.hbm_to_vmem [thread:$0]  %s256_s0, 256, %s18_s16, [#allocation3], %s200_s18, %s200_s18, %s201_s19  }
   0xe   :  { %s202_s22 = smov [#allocation5]  }
   0xf   :  { %s30_s23 = sshll.u32 %s202_s22, 4  ;;  %s31_s23 = int_to_ptr.vmem [resolvable:$true] %s30_s23 }
  0x10   :  { %s161_s24 = scalar_lea.vmem %s31_s23, 128  ;;  %p166_p6 = scmp.lt.s32.totalorder %s31_s23, %s31_s23 }
  0x11   :  { %p162_p5 = scmp.ne.s32.totalorder %s31_s23, %s161_s24  ;;  %p167_p7 = scmp.lt.s32.totalorder %s161_s24, %s161_s24 }
  0x13   :  { %p168_p8 = por %p167_p7, %p166_p6 }
  0x15   :  { %p169_p9 = pnand %p168_p8, %p162_p5 }
  0x17   :  { %172 = shalt.err (!%p169_p9)
}
  0x18   :  { %33 = dma.hbm_to_vmem [thread:$0]  %s257_s1, 128, %s31_s23, [#allocation6]  }
  0x19   :  { %193 = dma.done.wait [#allocation3], 256  }
  0x1a   :  { %194 = vsyncadd [#allocation3], 4294967040 }
  0x1b   :  { %195 = dma.done.wait [#allocation6], 128  }
  0x1c   :  { %196 = vsyncadd [#allocation6], 4294967168  ;;  %v44_v0 = vld [vmem:[#allocation2] sm:$0xff]  ;;  %v48_v1 = vld [vmem:[#allocation5] sm:$0xff]  ;;  %vm51_vm0 = vcmask 261120   ;;  %s203_s29 = smov [#allocation7]  }
  0x1d   :  { %v45_v2 = vld [vmem:[#allocation2 + $0x8] sm:$0xff]  ;;  %v46_v3 = vmul.f32 5.656854, %v44_v0  ;;  %v122_v31 = vld [vmem:[%s258_s2] ss:$0 sm:$0xff]  ;;  %s109_s30 = sshll.u32 %s203_s29, 4  ;;  %s110_s30 = int_to_ptr.vmem [resolvable:$true] %s109_s30 }
  0x1e   :  { %v47_v4 = vmul.f32 5.656854, %v45_v2  ;;  %v123_v33 = vld [vmem:[%s259_s3] ss:$0 sm:$0xff]  ;;  %s173_s2 = scalar_lea.vmem %s110_s30, 256  ;;  %p178_p11 = scmp.lt.s32.totalorder %s110_s30, %s110_s30 }
  0x1f   :  { %v49_v5 = vadd.f32 %v48_v1, %v46_v3  ;;  %p174_p10 = scmp.ne.s32.totalorder %s110_s30, %s173_s2  ;;  %p179_p12 = scmp.lt.s32.totalorder %s173_s2, %s173_s2 }
  0x20   :  { %v50_v6 = vadd.f32 %v48_v1, %v47_v4 }
  0x21   :  { %v52_v7 = vsel %vm51_vm0, %v49_v5, 0.0  ;;  %v58_v8 = vmul.f32 %v49_v5, %v49_v5  ;;  %p180_p13 = por %p179_p12, %p178_p11 }
  0x22   :  { %v59_v9 = vmul.f32 %v50_v6, %v50_v6  ;;  %53 = vadd.xlane.f32.xlu0 %v52_v7  ;;  %v55_v11 = vsel %vm51_vm0, %v50_v6, 0.0 }
  0x23   :  { %v60_v10 = vsel %vm51_vm0, %v58_v8, 0.0  ;;  %p181_p0 = pnand %p180_p13, %p174_p10 }
  0x24   :  { %61 = vadd.xlane.f32.xlu1 %v60_v10  ;;  %v63_v12 = vsel %vm51_vm0, %v59_v9, 0.0 }
  0x26   :  { %56 = vadd.xlane.f32.xlu0 %v55_v11 }
  0x28   :  { %64 = vadd.xlane.f32.xlu1 %v63_v12 }
  0xab   :  { %v54_v13 = vpop.xlane.xlu0 %53 }
  0xac   :  { %v66_v14 = vmul.f32 0.03125, %v54_v13 }
  0xad   :  { %v62_v15 = vpop.xlane.xlu1 %61 }
  0xae   :  { %v70_v16 = vmul.f32 %v66_v14, %v66_v14  ;;  %v68_v17 = vmul.f32 0.03125, %v62_v15  ;;  %v80_v29 = vsub.f32 %v49_v5, %v66_v14 }
  0xaf   :  { %v57_v18 = vpop.xlane.xlu0 %56 }
  0xb0   :  { %v72_v19 = vsub.f32 %v68_v17, %v70_v16  ;;  %v67_v20 = vmul.f32 0.03125, %v57_v18 }
  0xb1   :  { %v65_v21 = vpop.xlane.xlu1 %64 }
  0xb2   :  { %v74_v22 = vmax.f32 %v72_v19, 0.0  ;;  %v71_v23 = vmul.f32 %v67_v20, %v67_v20  ;;  %v69_v24 = vmul.f32 0.03125, %v65_v21  ;;  %v81_v34 = vsub.f32 %v50_v6, %v67_v20 }
  0xb4   :  { %v76_v25 = vadd.f32 1e-05, %v74_v22  ;;  %v73_v26 = vsub.f32 %v69_v24, %v71_v23 }
  0xb6   :  { %129 = vrsqrt.f32 %v76_v25  ;;  %v75_v27 = vmax.f32 %v73_v26, 0.0 }
  0xb8   :  { %v77_v28 = vadd.f32 1e-05, %v75_v27 }
  0xba   :  { %131 = vrsqrt.f32 %v77_v28 }
  0xc3   :  { %v130_v30 = vpop.eup %129 }
  0xc4   :  { %v82_v32 = vmul.f32 %v130_v30, %v80_v29 }
  0xc6   :  { %v91_v35 = vmul.f32 %v122_v31, %v82_v32 }
  0xc7   :  { %v132_v36 = vpop.eup %131 }
  0xc8   :  { %v83_v37 = vmul.f32 %v132_v36, %v81_v34  ;;  %v100_v38 = vadd.f32 %v123_v33, %v91_v35 }
  0xca   :  { %v92_v39 = vmul.f32 %v122_v31, %v83_v37  ;;  %102 = vst.msk [vmem:[#allocation7] sm:$0xff] %vm51_vm0, %v100_v38 }
  0xcc   :  { %v101_v40 = vadd.f32 %v123_v33, %v92_v39 }
  0xce   :  { %103 = vst.msk [vmem:[#allocation7 + $0x8] sm:$0xff] %vm51_vm0, %v101_v40 }
  0xcf   :  { %184 = shalt.err (!%p181_p0)
}
  0xd0   :  { %115 = dma.vmem_to_hbm [thread:$0]  %s110_s30, 256, %s260_s4, [#allocation4], %s200_s18, %s200_s18, %s201_s19  }
  0xd1   :  { %197 = dma.done.wait [#allocation4], 256  }
  0xd2   :  { %198 = vsyncadd [#allocation4], 4294967040 }
  0xd3   :  { %119 = vsyncpa [#allocation3], 1 }
  0xd4   :  { %120 = vsyncpa [#allocation6], 1 }
  0xd5   :  { %121 = vsyncpa [#allocation4], 1 }

</bundles_post_ra>
